<compile_context>
chip_gen: v6e
topology: v6e:2x2x1
jax: 0.10.0
libtpu: 0.0.40
codegen_flags: <defaults>
</compile_context>

<pallas_src>
import jax
import jax.numpy as jnp
from jax import lax
from jax.experimental import pallas as pl
from jax.experimental.pallas import tpu as pltpu


def _lora_linear_kernel(x_ref, w_ref, b_ref, xa_ref, bmat_ref, o_ref, acc_ref):
    # x:    (tm, tk)        input tile
    # w:    (tn, tk)        base weight tile, torch (out, in) layout
    # b:    (1, tn)         bias tile (f32)
    # xa:   (tm, rank_pad)  (x @ A) * scaling, precomputed, lane-padded
    # bmat: (rank_pad, tn)  lora_B tile, lane-padded
    # acc:  (tm, tn)        f32 accumulator scratch
    k = pl.program_id(2)

    @pl.when(k == 0)
    def _init():
        acc_ref[...] = jnp.zeros_like(acc_ref)

    # Base path: x @ W^T without materializing a transposed weight
    # (contract dim 1 of x with dim 1 of W).
    acc_ref[...] += lax.dot_general(
        x_ref[...], w_ref[...],
        dimension_numbers=(((1,), (1,)), ((), ())),
        preferred_element_type=jnp.float32)

    @pl.when(k == pl.num_programs(2) - 1)
    def _finalize():
        # LoRA right product + bias, once per (i, j) output tile.
        lora = jnp.dot(xa_ref[...], bmat_ref[...],
                       preferred_element_type=jnp.float32)
        o_ref[...] = (acc_ref[...] + lora + b_ref[...]).astype(o_ref.dtype)


def _round_up(a, b):
    return (a + b - 1) // b * b


def _pad2d(a, rows, cols):
    pr, pc = rows - a.shape[0], cols - a.shape[1]
    if pr == 0 and pc == 0:
        return a
    return jnp.pad(a, ((0, pr), (0, pc)))


def lora_linear(x, weight, bias, lora_A, lora_B, *, alpha=32, rank=4,
                tm=256, tn=512, tk=512, compute_dtype=None):
    """LoRA linear forward.

    x: (..., in_features); weight: (out, in) (torch layout); bias: (out,);
    lora_A: (in, rank); lora_B: (rank, out). Returns (..., out_features).
    """
    out_features, in_features = weight.shape
    assert lora_A.shape == (in_features, rank)
    assert lora_B.shape == (rank, out_features)
    scaling = alpha / rank

    lead = x.shape[:-1]
    x2d = x.reshape(-1, in_features)

    if compute_dtype is not None:
        x2d = x2d.astype(compute_dtype)
        weight = weight.astype(compute_dtype)
        lora_A = lora_A.astype(compute_dtype)
        lora_B = lora_B.astype(compute_dtype)

    dtype = x2d.dtype
    M, K, N = x2d.shape[0], in_features, out_features

    # LoRA left product (tiny: M x rank), scaling folded in. f32 accumulation,
    # stored in the compute dtype so the in-kernel xa @ B matmul is MXU-native.
    xa = (jnp.dot(x2d, lora_A, preferred_element_type=jnp.float32)
          * jnp.float32(scaling)).astype(dtype)

    # Tile sizes: (8,128)-aligned, clamped for small problems.
    tm = _round_up(min(tm, _round_up(M, 8)), 8)
    tn = _round_up(min(tn, _round_up(N, 128)), 128)
    tk = _round_up(min(tk, _round_up(K, 128)), 128)
    rank_pad = _round_up(rank, 128)          # lane-dense LoRA intermediate

    m_pad = _round_up(M, tm)
    n_pad = _round_up(N, tn)
    k_pad = _round_up(K, tk)

    x_p = _pad2d(x2d, m_pad, k_pad)
    w_p = _pad2d(weight, n_pad, k_pad)                         # keep (out, in)
    b_p = _pad2d(bias.reshape(1, N).astype(jnp.float32), 1, n_pad)
    xa_p = _pad2d(xa, m_pad, rank_pad)
    bB_p = _pad2d(lora_B, rank_pad, n_pad)

    grid = (m_pad // tm, n_pad // tn, k_pad // tk)

    itemsize = jnp.dtype(dtype).itemsize
    cost = pl.CostEstimate(
        flops=2 * m_pad * k_pad * n_pad + 2 * m_pad * rank_pad * n_pad,
        transcendentals=0,
        bytes_accessed=int((x_p.size + w_p.size + xa_p.size + bB_p.size
                            + m_pad * n_pad) * itemsize + b_p.size * 4),
    )

    out_p = pl.pallas_call(
        _lora_linear_kernel,
        out_shape=jax.ShapeDtypeStruct((m_pad, n_pad), dtype),
        grid_spec=pltpu.PrefetchScalarGridSpec(
            num_scalar_prefetch=0,
            grid=grid,
            in_specs=[
                pl.BlockSpec((tm, tk), lambda i, j, k: (i, k)),        # x
                pl.BlockSpec((tn, tk), lambda i, j, k: (j, k)),        # W (out,in)
                pl.BlockSpec((1, tn), lambda i, j, k: (0, j)),         # bias
                pl.BlockSpec((tm, rank_pad), lambda i, j, k: (i, 0)),  # xa
                pl.BlockSpec((rank_pad, tn), lambda i, j, k: (0, j)),  # lora_B
            ],
            out_specs=pl.BlockSpec((tm, tn), lambda i, j, k: (i, j)),
            scratch_shapes=[pltpu.VMEM((tm, tn), jnp.float32)],
        ),
        compiler_params=pltpu.CompilerParams(
            dimension_semantics=("parallel", "parallel", "arbitrary"),
            vmem_limit_bytes=32 * 1024 * 1024,   # tiles use only a few MiB
        ),
        cost_estimate=cost,
    )(x_p, w_p, b_p, xa_p, bB_p)

    return out_p[:M, :N].reshape(*lead, N)


if __name__ == "__main__":
    # Small shapes consistent with the module: batch=2, seq=8, hidden=32
    batch, seq = 2, 8
    in_features, out_features = 32, 32
    rank, alpha = 4, 32

    key = jax.random.PRNGKey(0)
    kx, kw, kb, ka, kbb = jax.random.split(key, 5)

    x = jax.random.normal(kx, (batch, seq, in_features), dtype=jnp.float32)

    # Base Linear params (torch layout: weight (out, in), bias (out,))
    bound_w = 1.0 / (in_features ** 0.5)
    weight = jax.random.uniform(kw, (out_features, in_features),
                                minval=-bound_w, maxval=bound_w, dtype=jnp.float32)
    bias = jax.random.uniform(kb, (out_features,),
                              minval=-bound_w, maxval=bound_w, dtype=jnp.float32)

    # LoRA params: lora_A kaiming-uniform-like; lora_B is zeros in __init__,
    # but use small random values so the LoRA path is exercised non-trivially.
    bound_a = 1.0 / (rank ** 0.5)
    lora_A = jax.random.uniform(ka, (in_features, rank),
                                minval=-bound_a, maxval=bound_a, dtype=jnp.float32)
    lora_B = 0.01 * jax.random.normal(kbb, (rank, out_features), dtype=jnp.float32)

    # Pure-JAX reference of the forward semantics.
    scaling = alpha / rank
    ref = (x @ weight.T + bias) + (x @ lora_A @ lora_B) * scaling

    # f32 path (exact validation).
    out = lora_linear(x, weight, bias, lora_A, lora_B, alpha=alpha, rank=rank)
    out = jax.block_until_ready(out)
    assert out.shape == (batch, seq, out_features)
    assert jnp.allclose(out, ref, atol=2e-5, rtol=2e-5), "f32 mismatch vs reference"

    # bf16 MXU path (production dtype) — f32 accumulation, looser tolerance.
    out_bf16 = lora_linear(x, weight, bias, lora_A, lora_B, alpha=alpha, rank=rank,
                           compute_dtype=jnp.bfloat16)
    out_bf16 = jax.block_until_ready(out_bf16)
    assert jnp.allclose(out_bf16.astype(jnp.float32), ref, atol=5e-2, rtol=5e-2), \
        "bf16 mismatch vs reference"

    print("KERNEL_OK")
</pallas_src>

<mosaic_0001>
module attributes {stable_mosaic.version = 11 : i64} {
  func.func @_lora_linear_kernel(%arg0: i32, %arg1: i32, %arg2: i32, %arg3: memref<16x128xf32, #tpu.memory_space<vmem>>, %arg4: memref<128x128xf32, #tpu.memory_space<vmem>>, %arg5: memref<1x128xf32, #tpu.memory_space<vmem>>, %arg6: memref<16x128xf32, #tpu.memory_space<vmem>>, %arg7: memref<128x128xf32, #tpu.memory_space<vmem>>, %arg8: memref<16x128xf32, #tpu.memory_space<vmem>>, %arg9: memref<16x128xf32, #tpu.memory_space<vmem>>) attributes {dimension_semantics = [#tpu.dimension_semantics<parallel>, #tpu.dimension_semantics<parallel>, #tpu.dimension_semantics<arbitrary>], iteration_bounds = array<i64: 1, 1, 1>, scalar_prefetch = 0 : i64, scratch_operands = 1 : i64, tpu.core_type = #tpu.core_type<tc>, window_params = [{transform_indices = @transform_0, window_bounds = array<i64: 16, 128>}, {transform_indices = @transform_1, window_bounds = array<i64: 128, 128>}, {transform_indices = @transform_2, window_bounds = array<i64: 1, 128>}, {transform_indices = @transform_3, window_bounds = array<i64: 16, 128>}, {transform_indices = @transform_4, window_bounds = array<i64: 128, 128>}, {transform_indices = @transform_5, window_bounds = array<i64: 16, 128>}]} {
    %c0_i32 = arith.constant 0 : i32
    %0 = arith.cmpi eq, %arg2, %c0_i32 : i32
    %1 = arith.extui %0 : i1 to i32
    %c0_i32_0 = arith.constant 0 : i32
    %2 = arith.cmpi ne, %1, %c0_i32_0 : i32
    scf.if %2 {
      %cst_10 = arith.constant 0.000000e+00 : f32
      %12 = vector.broadcast %cst_10 : f32 to vector<16x128xf32>
      %c0_11 = arith.constant 0 : index
      %c0_12 = arith.constant 0 : index
      %13 = vector.load %arg9[%c0_11, %c0_12] : memref<16x128xf32, #tpu.memory_space<vmem>>, vector<16x128xf32>
      tpu.vector_store %arg9[%c0_11, %c0_12], %12 {strides = array<i32>} : memref<16x128xf32, #tpu.memory_space<vmem>>, vector<16x128xf32>,
    } else {
    }
    %c0 = arith.constant 0 : index
    %c0_1 = arith.constant 0 : index
    %3 = vector.load %arg9[%c0, %c0_1] : memref<16x128xf32, #tpu.memory_space<vmem>>, vector<16x128xf32>
    %c0_2 = arith.constant 0 : index
    %c0_3 = arith.constant 0 : index
    %4 = vector.load %arg3[%c0_2, %c0_3] : memref<16x128xf32, #tpu.memory_space<vmem>>, vector<16x128xf32>
    %c0_4 = arith.constant 0 : index
    %c0_5 = arith.constant 0 : index
    %5 = vector.load %arg4[%c0_4, %c0_5] : memref<128x128xf32, #tpu.memory_space<vmem>>, vector<128x128xf32>
    %cst = arith.constant dense<0.000000e+00> : vector<16x128xf32>
    %6 = tpu.matmul %4, %5, %cst {dimension_numbers = #tpu.dot_dimension_numbers<[1], [1], [0], [0], [0, 0, 1, 0], [], []>} : vector<16x128xf32>, vector<128x128xf32>, vector<16x128xf32> -> vector<16x128xf32>
    %7 = arith.addf %3, %6 : vector<16x128xf32>
    %c0_6 = arith.constant 0 : index
    %c0_7 = arith.constant 0 : index
    %8 = vector.load %arg9[%c0_6, %c0_7] : memref<16x128xf32, #tpu.memory_space<vmem>>, vector<16x128xf32>
    tpu.vector_store %arg9[%c0_6, %c0_7], %7 {strides = array<i32>} : memref<16x128xf32, #tpu.memory_space<vmem>>, vector<16x128xf32>,
    %c0_i32_8 = arith.constant 0 : i32
    %9 = arith.cmpi eq, %arg2, %c0_i32_8 : i32
    %10 = arith.extui %9 : i1 to i32
    %c0_i32_9 = arith.constant 0 : i32
    %11 = arith.cmpi ne, %10, %c0_i32_9 : i32
    scf.if %11 {
      %c0_10 = arith.constant 0 : index
      %c0_11 = arith.constant 0 : index
      %12 = vector.load %arg6[%c0_10, %c0_11] : memref<16x128xf32, #tpu.memory_space<vmem>>, vector<16x128xf32>
      %c0_12 = arith.constant 0 : index
      %c0_13 = arith.constant 0 : index
      %13 = vector.load %arg7[%c0_12, %c0_13] : memref<128x128xf32, #tpu.memory_space<vmem>>, vector<128x128xf32>
      %cst_14 = arith.constant dense<0.000000e+00> : vector<16x128xf32>
      %14 = tpu.matmul %12, %13, %cst_14 {dimension_numbers = #tpu.dot_dimension_numbers<[1], [0], [0], [1], [0, 0, 1, 1], [], []>} : vector<16x128xf32>, vector<128x128xf32>, vector<16x128xf32> -> vector<16x128xf32>
      %c0_15 = arith.constant 0 : index
      %c0_16 = arith.constant 0 : index
      %15 = vector.load %arg9[%c0_15, %c0_16] : memref<16x128xf32, #tpu.memory_space<vmem>>, vector<16x128xf32>
      %16 = arith.addf %15, %14 : vector<16x128xf32>
      %c0_17 = arith.constant 0 : index
      %c0_18 = arith.constant 0 : index
      %17 = vector.load %arg5[%c0_17, %c0_18] : memref<1x128xf32, #tpu.memory_space<vmem>>, vector<1x128xf32>
      %18 = vector.broadcast %17 : vector<1x128xf32> to vector<16x128xf32>
      %19 = arith.addf %16, %18 : vector<16x128xf32>
      %c0_19 = arith.constant 0 : index
      %c0_20 = arith.constant 0 : index
      %20 = vector.load %arg8[%c0_19, %c0_20] : memref<16x128xf32, #tpu.memory_space<vmem>>, vector<16x128xf32>
      tpu.vector_store %arg8[%c0_19, %c0_20], %19 {strides = array<i32>} : memref<16x128xf32, #tpu.memory_space<vmem>>, vector<16x128xf32>,
    } else {
    }
    return
  }
  func.func @transform_0(%arg0: i32, %arg1: i32, %arg2: i32) -> (i32, i32) {
    %c0_i32 = arith.constant 0 : i32
    return %arg0, %arg2 : i32, i32
  }
  func.func @transform_1(%arg0: i32, %arg1: i32, %arg2: i32) -> (i32, i32) {
    %c0_i32 = arith.constant 0 : i32
    return %arg1, %arg2 : i32, i32
  }
  func.func @transform_2(%arg0: i32, %arg1: i32, %arg2: i32) -> (i32, i32) {
    %c0_i32 = arith.constant 0 : i32
    %c0_i32_0 = arith.constant 0 : i32
    return %c0_i32, %arg1 : i32, i32
  }
  func.func @transform_3(%arg0: i32, %arg1: i32, %arg2: i32) -> (i32, i32) {
    %c0_i32 = arith.constant 0 : i32
    %c0_i32_0 = arith.constant 0 : i32
    return %arg0, %c0_i32 : i32, i32
  }
  func.func @transform_4(%arg0: i32, %arg1: i32, %arg2: i32) -> (i32, i32) {
    %c0_i32 = arith.constant 0 : i32
    %c0_i32_0 = arith.constant 0 : i32
    return %c0_i32, %arg1 : i32, i32
  }
  func.func @transform_5(%arg0: i32, %arg1: i32, %arg2: i32) -> (i32, i32) {
    %c0_i32 = arith.constant 0 : i32
    return %arg0, %arg1 : i32, i32
  }
}

</mosaic_0001>

<bundles_post_ra>
// kernel: tpu_custom_call.1
= control target key start
LH: loop header
LB: loop body
LE: loop exit
PB: predicated region body
PF: predicated region fallthrough
CT: control target
= control target key end

     0   :  { %10 = vsyncpa [#allocation4], 0  ;;  %s603_s0 = inlined_call_operand.hbm [shape: f32[16,128], index: 0, kind: input, shape index: {}]   ;;  %s604_s1 = inlined_call_operand.hbm [shape: f32[128,128], index: 1, kind: input, shape index: {}]   ;;  %s605_s2 = inlined_call_operand.vmem [shape: f32[1,128], index: 2, kind: input, shape index: {}]   ;;  %s606_s3 = inlined_call_operand.hbm [shape: f32[16,128], index: 3, kind: input, shape index: {}]   ;;  %s607_s4 = inlined_call_operand.hbm [shape: f32[128,128], index: 4, kind: input, shape index: {}]   ;;  %s608_s5 = inlined_call_operand.hbm [shape: f32[16,128], index: 5, kind: output, shape index: {}]  }
   0x1   :  { %11 = vsyncpa [#allocation7], 0 }
   0x2   :  { %12 = vsyncpa [#allocation10], 0 }
   0x3   :  { %13 = vsyncpa [#allocation5], 0  ;;  %s533_s18 = smov [#allocation6]   ;;  %s534_s20 = smov [#allocation3]  }
   0x4   :  { %s31_s19 = sshll.u32 %s533_s18, 4  ;;  %s19_s21 = sshll.u32 %s534_s20, 4  ;;  %s32_s19 = int_to_ptr.vmem [resolvable:$true] %s31_s19  ;;  %s20_s21 = int_to_ptr.vmem [resolvable:$true] %s19_s21 }
   0x5   :  { %s433_s22 = scalar_lea.vmem %s32_s19, 2048  ;;  %p438_p1 = scmp.lt.s32.totalorder %s32_s19, %s32_s19 }
   0x6   :  { %p434_p0 = scmp.ne.s32.totalorder %s32_s19, %s433_s22  ;;  %p439_p2 = scmp.lt.s32.totalorder %s433_s22, %s433_s22 }
   0x8   :  { %p440_p3 = por %p439_p2, %p438_p1 }
   0xa   :  { %p441_p4 = pnand %p440_p3, %p434_p0 }
   0xc   :  { %444 = shalt.err (!%p441_p4)
}
   0xd   :  { %s535_s23 = smov 128   ;;  %s536_s24 = smov 8  }
   0xe   :  { %37 = dma.hbm_to_vmem [thread:$0]  %s604_s1, 2048, %s32_s19, [#allocation7], %s535_s23, %s535_s23, %s536_s24  }
   0xf   :  { %s453_s27 = scalar_lea.vmem %s20_s21, 256  ;;  %p458_p6 = scmp.lt.s32.totalorder %s20_s21, %s20_s21 }
  0x10   :  { %p454_p5 = scmp.ne.s32.totalorder %s20_s21, %s453_s27  ;;  %p459_p7 = scmp.lt.s32.totalorder %s453_s27, %s453_s27 }
  0x12   :  { %p460_p8 = por %p459_p7, %p458_p6 }
  0x14   :  { %p461_p9 = pnand %p460_p8, %p454_p5 }
  0x16   :  { %464 = shalt.err (!%p461_p9)
}
  0x17   :  { %25 = dma.hbm_to_vmem [thread:$0]  %s603_s0, 256, %s20_s21, [#allocation4], %s535_s23, %s535_s23, %s536_s24  }
  0x18   :  { %s537_s30 = smov [#allocation8]   ;;  %s538_s7 = smov [#allocation9]  }
  0x19   :  { %s45_s6 = sshll.u32 %s537_s30, 4  ;;  %s57_s8 = sshll.u32 %s538_s7, 4  ;;  %s46_s6 = int_to_ptr.vmem [resolvable:$true] %s45_s6  ;;  %s58_s8 = int_to_ptr.vmem [resolvable:$true] %s57_s8 }
  0x1a   :  { %s473_s1 = scalar_lea.vmem %s46_s6, 256  ;;  %p478_p11 = scmp.lt.s32.totalorder %s46_s6, %s46_s6 }
  0x1b   :  { %p474_p10 = scmp.ne.s32.totalorder %s46_s6, %s473_s1  ;;  %p479_p12 = scmp.lt.s32.totalorder %s473_s1, %s473_s1 }
  0x1d   :  { %p480_p13 = por %p479_p12, %p478_p11 }
  0x1f   :  { %p481_p0 = pnand %p480_p13, %p474_p10 }
  0x21   :  { %484 = shalt.err (!%p481_p0)
}
  0x22   :  { %51 = dma.hbm_to_vmem [thread:$0]  %s606_s3, 256, %s46_s6, [#allocation7], %s535_s23, %s535_s23, %s536_s24  }
  0x23   :  { %s493_s0 = scalar_lea.vmem %s58_s8, 2048  ;;  %p498_p2 = scmp.lt.s32.totalorder %s58_s8, %s58_s8 }
  0x24   :  { %p494_p1 = scmp.ne.s32.totalorder %s58_s8, %s493_s0  ;;  %p499_p3 = scmp.lt.s32.totalorder %s493_s0, %s493_s0 }
  0x26   :  { %p500_p4 = por %p499_p3, %p498_p2 }
  0x28   :  { %p501_p5 = pnand %p500_p4, %p494_p1 }
  0x2a   :  { %504 = shalt.err (!%p501_p5)
}
  0x2b   :  { %63 = dma.hbm_to_vmem [thread:$0]  %s607_s4, 2048, %s58_s8, [#allocation10], %s535_s23, %s535_s23, %s536_s24  }
  0x2c   :  { %525 = dma.done.wait [#allocation4], 256  }
  0x2d   :  { %526 = vsyncadd [#allocation4], 4294967040 }
  0x2e   :  { %527 = dma.done.wait [#allocation7], 2304  }
  0x2f   :  { %528 = vsyncadd [#allocation7], 4294964992 }
  0x30   :  { %529 = dma.done.wait [#allocation10], 2048  }
  0x31   :  { %530 = vsyncadd [#allocation10], 4294965248  ;;  %v101_v0 = vld [vmem:[#allocation6 + $0x78] sm:$0xff]  ;;  %v100_v1 = vld [vmem:[#allocation6 + $0x70] sm:$0xff]  ;;  %s539_s13 = smov [#allocation11]  }
  0x32   :  { %348 = vmatprep.subr.mxu0 %v101_v0  ;;  %v201_v2 = vld [vmem:[#allocation9 + $0x78] sm:$0xff]  ;;  %v200_v3 = vld [vmem:[#allocation9 + $0x70] sm:$0xff]  ;;  %v199_v5 = vld [vmem:[#allocation9 + $0x68] sm:$0xff]  ;;  %s297_s14 = sshll.u32 %s539_s13, 4  ;;  %s298_s14 = int_to_ptr.vmem [resolvable:$true] %s297_s14 }
  0x33   :  { %349 = vmatpush3.xpose.msra.mxu0 %v101_v0  ;;  %383 = vmatprep.subr.mxu1 %v201_v2  ;;  %v99_v4 = vld [vmem:[#allocation6 + $0x68] sm:$0xff]  ;;  %v198_v6 = vld [vmem:[#allocation9 + $0x60] sm:$0xff]  ;;  %v98_v7 = vld [vmem:[#allocation6 + $0x60] sm:$0xff]  ;;  %s505_s15 = scalar_lea.vmem %s298_s14, 256  ;;  %p510_p7 = scmp.lt.s32.totalorder %s298_s14, %s298_s14 }
  0x34   :  { %350 = vmatprep.subr.mxu0 %v100_v1  ;;  %384 = vmatpush3.msra.mxu1 %v201_v2  ;;  %v197_v8 = vld [vmem:[#allocation9 + $0x58] sm:$0xff]  ;;  %v196_v9 = vld [vmem:[#allocation9 + $0x50] sm:$0xff]  ;;  %v84_v11 = vld [vmem:[#allocation3] sm:$0xff]  ;;  %p506_p6 = scmp.ne.s32.totalorder %s298_s14, %s505_s15  ;;  %p511_p8 = scmp.lt.s32.totalorder %s505_s15, %s505_s15 }
  0x35   :  { %385 = vmatprep.subr.mxu1 %v200_v3  ;;  %v184_v10 = vld [vmem:[#allocation8] sm:$0xff]  ;;  %v97_v12 = vld [vmem:[#allocation6 + $0x58] sm:$0xff]  ;;  %380 = vmatprep.mubr.f32.mxu0 %v84_v11  ;;  %v194_v14 = vld [vmem:[#allocation9 + $0x40] sm:$0xff] }
  0x36   :  { %386 = vmatpush3.msra.mxu1 %v200_v3  ;;  %v195_v13 = vld [vmem:[#allocation9 + $0x48] sm:$0xff]  ;;  %415 = vmatprep.mubr.f32.mxu1 %v184_v10  ;;  %v96_v15 = vld [vmem:[#allocation6 + $0x50] sm:$0xff]  ;;  %v193_v16 = vld [vmem:[#allocation9 + $0x38] sm:$0xff]  ;;  %p512_p9 = por %p511_p8, %p510_p7 }
  0x37   :  { %351 = vmatpush3.xpose.msra.mxu0 %v100_v1  ;;  %387 = vmatprep.subr.mxu1 %v199_v5  ;;  %v192_v17 = vld [vmem:[#allocation9 + $0x30] sm:$0xff]  ;;  %v95_v18 = vld [vmem:[#allocation6 + $0x48] sm:$0xff]  ;;  %v191_v19 = vld [vmem:[#allocation9 + $0x28] sm:$0xff] }
  0x38   :  { %352 = vmatprep.subr.mxu0 %v99_v4  ;;  %388 = vmatpush3.msra.mxu1 %v199_v5  ;;  %v190_v20 = vld [vmem:[#allocation9 + $0x20] sm:$0xff]  ;;  %v94_v21 = vld [vmem:[#allocation6 + $0x40] sm:$0xff]  ;;  %v189_v22 = vld [vmem:[#allocation9 + $0x18] sm:$0xff]  ;;  %p513_p10 = pnand %p512_p9, %p506_p6 }
  0x39   :  { %389 = vmatprep.subr.mxu1 %v198_v6  ;;  %v188_v23 = vld [vmem:[#allocation9 + $0x10] sm:$0xff]  ;;  %v93_v24 = vld [vmem:[#allocation6 + $0x38] sm:$0xff]  ;;  %v186_v26 = vld [vmem:[#allocation9] sm:$0xff] }
  0x3a   :  { %390 = vmatpush3.msra.mxu1 %v198_v6  ;;  %v187_v25 = vld [vmem:[#allocation9 + $0x8] sm:$0xff]  ;;  %v92_v27 = vld [vmem:[#allocation6 + $0x30] sm:$0xff]  ;;  %v185_v28 = vld [vmem:[#allocation8 + $0x8] sm:$0xff] }
  0x3b   :  { %353 = vmatpush3.xpose.msra.mxu0 %v99_v4  ;;  %391 = vmatprep.subr.mxu1 %v197_v8  ;;  %v91_v29 = vld [vmem:[#allocation6 + $0x28] sm:$0xff]  ;;  %v90_v30 = vld [vmem:[#allocation6 + $0x20] sm:$0xff]  ;;  %v89_v31 = vld [vmem:[#allocation6 + $0x18] sm:$0xff] }
  0x3c   :  { %354 = vmatprep.subr.mxu0 %v98_v7  ;;  %392 = vmatpush3.msra.mxu1 %v197_v8  ;;  %v88_v32 = vld [vmem:[#allocation6 + $0x10] sm:$0xff]  ;;  %v87_v33 = vld [vmem:[#allocation6 + $0x8] sm:$0xff]  ;;  %v86_v34 = vld [vmem:[#allocation6] sm:$0xff] }
  0x3d   :  { %393 = vmatprep.subr.mxu1 %v196_v9  ;;  %v85_v35 = vld [vmem:[#allocation3 + $0x8] sm:$0xff]  ;;  %v311_v38 = vld [vmem:[%s605_s2] ss:$0 sm:$0xff] }
  0x3e   :  { %394 = vmatpush3.msra.mxu1 %v196_v9 }
  0x3f   :  { %355 = vmatpush3.xpose.msra.mxu0 %v98_v7  ;;  %395 = vmatprep.subr.mxu1 %v195_v13 }
  0x40   :  { %356 = vmatprep.subr.mxu0 %v97_v12  ;;  %396 = vmatpush3.msra.mxu1 %v195_v13 }
  0x41   :  { %397 = vmatprep.subr.mxu1 %v194_v14 }
  0x42   :  { %398 = vmatpush3.msra.mxu1 %v194_v14 }
  0x43   :  { %357 = vmatpush3.xpose.msra.mxu0 %v97_v12  ;;  %399 = vmatprep.subr.mxu1 %v193_v16 }
  0x44   :  { %358 = vmatprep.subr.mxu0 %v96_v15  ;;  %400 = vmatpush3.msra.mxu1 %v193_v16 }
  0x45   :  { %401 = vmatprep.subr.mxu1 %v192_v17 }
  0x46   :  { %402 = vmatpush3.msra.mxu1 %v192_v17 }
  0x47   :  { %359 = vmatpush3.xpose.msra.mxu0 %v96_v15  ;;  %403 = vmatprep.subr.mxu1 %v191_v19 }
  0x48   :  { %360 = vmatprep.subr.mxu0 %v95_v18  ;;  %404 = vmatpush3.msra.mxu1 %v191_v19 }
  0x49   :  { %405 = vmatprep.subr.mxu1 %v190_v20 }
  0x4a   :  { %406 = vmatpush3.msra.mxu1 %v190_v20 }
  0x4b   :  { %361 = vmatpush3.xpose.msra.mxu0 %v95_v18  ;;  %407 = vmatprep.subr.mxu1 %v189_v22 }
  0x4c   :  { %362 = vmatprep.subr.mxu0 %v94_v21  ;;  %408 = vmatpush3.msra.mxu1 %v189_v22 }
  0x4d   :  { %409 = vmatprep.subr.mxu1 %v188_v23 }
  0x4e   :  { %410 = vmatpush3.msra.mxu1 %v188_v23 }
  0x4f   :  { %363 = vmatpush3.xpose.msra.mxu0 %v94_v21  ;;  %411 = vmatprep.subr.mxu1 %v187_v25 }
  0x50   :  { %364 = vmatprep.subr.mxu0 %v93_v24  ;;  %412 = vmatpush3.msra.mxu1 %v187_v25 }
  0x51   :  { %413 = vmatprep.subr.mxu1 %v186_v26 }
  0x52   :  { %414 = vmatpush3.msra.mxu1 %v186_v26 }
  0x53   :  { %365 = vmatpush3.xpose.msra.mxu0 %v93_v24  ;;  %416 = vmatmul.mubr.f32.vlgmr.msra.gmra.mxu1 %v185_v28 }
  0x54   :  { %366 = vmatprep.subr.mxu0 %v92_v27 }
  0x57   :  { %367 = vmatpush3.xpose.msra.mxu0 %v92_v27 }
  0x58   :  { %368 = vmatprep.subr.mxu0 %v91_v29 }
  0x5b   :  { %369 = vmatpush3.xpose.msra.mxu0 %v91_v29 }
  0x5c   :  { %370 = vmatprep.subr.mxu0 %v90_v30 }
  0x5f   :  { %371 = vmatpush3.xpose.msra.mxu0 %v90_v30 }
  0x60   :  { %372 = vmatprep.subr.mxu0 %v89_v31 }
  0x63   :  { %373 = vmatpush3.xpose.msra.mxu0 %v89_v31 }
  0x64   :  { %374 = vmatprep.subr.mxu0 %v88_v32 }
  0x67   :  { %375 = vmatpush3.xpose.msra.mxu0 %v88_v32 }
  0x68   :  { %376 = vmatprep.subr.mxu0 %v87_v33 }
  0x6b   :  { %377 = vmatpush3.xpose.msra.mxu0 %v87_v33 }
  0x6c   :  { %378 = vmatprep.subr.mxu0 %v86_v34 }
  0x6f   :  { %379 = vmatpush3.xpose.msra.mxu0 %v86_v34 }
  0x72   :  { %381 = vmatmul.mubr.f32.vlgmr.msra.gmra.mxu0 %v85_v35 }
 0x113   :  { %v417_v36 = vpop.f32.mrf.mxu1 }
 0x115   :  { %v268_v40 = vpop.f32.mrf.mxu1 }
 0x132   :  { %v382_v37 = vpop.f32.mrf.mxu0 }
 0x133   :  { %v280_v39 = vadd.f32 %v417_v36, %v382_v37 }
 0x134   :  { %v168_v41 = vpop.f32.mrf.mxu0 }
 0x135   :  { %v289_v42 = vadd.f32 %v311_v38, %v280_v39  ;;  %v279_v43 = vadd.f32 %v268_v40, %v168_v41 }
 0x137   :  { %291 = vst [vmem:[#allocation11 + $0x8] sm:$0xff] %v289_v42  ;;  %v288_v44 = vadd.f32 %v311_v38, %v279_v43 }
 0x139   :  { %290 = vst [vmem:[#allocation11] sm:$0xff] %v288_v44 }
 0x13a   :  { %516 = shalt.err (!%p513_p10)
}
 0x13b   :  { %303 = dma.vmem_to_hbm [thread:$0]  %s298_s14, 256, %s608_s5, [#allocation5], %s535_s23, %s535_s23, %s536_s24  }
 0x13c   :  { %531 = dma.done.wait [#allocation5], 256  }
 0x13d   :  { %532 = vsyncadd [#allocation5], 4294967040 }
 0x13e   :  { %307 = vsyncpa [#allocation4], 1 }
 0x13f   :  { %308 = vsyncpa [#allocation7], 1 }
 0x140   :  { %309 = vsyncpa [#allocation10], 1 }
 0x141   :  { %310 = vsyncpa [#allocation5], 1 }

</bundles_post_ra>
